<compile_context>
chip_gen: v7x
topology: tpu7x:2x2x1
jax: 0.10.0
libtpu: 0.0.40
codegen_flags: <defaults>
</compile_context>

<pallas_src>
import functools

import jax
import jax.numpy as jnp
from jax import lax
from jax.experimental import pallas as pl
from jax.experimental.pallas import tpu as pltpu


_SQRT_HALF = 0.7071067811865476  # 1/sqrt(2) for the exact (erf) GELU


def _gelu_exact_f32(x):
    # torch.nn.GELU() default is the exact erf formulation; keep math in f32.
    return 0.5 * x * (1.0 + lax.erf(x * _SQRT_HALF))


def _round_up(x, m):
    return (x + m - 1) // m * m


def _vmem_capacity_bytes():
    """Physical VMEM per TensorCore (fallback: conservative 64 MiB == v7x)."""
    try:
        cap = int(getattr(pltpu.get_tpu_info(), "vmem_capacity_bytes", 0))
        if cap > 0:
            return cap
    except Exception:
        pass
    return 64 << 20


def _vmem_budget_and_limit():
    cap = _vmem_capacity_bytes()
    if cap >= (96 << 20):       # v5e / v6e: 128 MiB physical -> use most of it
        return int(cap * 0.70), int(cap * 0.82)
    # v7x (64 MiB per TC): leave headroom for compiler internal scratch.
    return int(cap * 0.60), int(cap * 0.80)


def _vmem_bytes_resident(tm, d_in_p, d_hid_p, d_out_p, out_itemsize):
    """Footprint of the weights-resident path (weights counted double-buffered,
    conservatively, even though their block index never changes)."""
    return (2 * tm * d_in_p * 2              # x tile (bf16), 2 buffers
            + 2 * d_in_p * d_hid_p * 2       # W1 (bf16)
            + 2 * d_hid_p * d_out_p * 2      # W2 (bf16)
            + 2 * tm * d_out_p * out_itemsize  # out tile, 2 buffers
            + tm * d_hid_p * 4               # live f32 h
            + tm * d_hid_p * 2               # bf16 cast of h
            + tm * d_out_p * 4               # live f32 fc2 result
            + 2 * (d_hid_p + d_out_p) * 4)   # bias tiles (f32)


def _vmem_bytes_streamed(tm, d_in_p, tk_hid, d_out_p, out_itemsize):
    """Footprint of one pipelined step of the hidden-streamed path."""
    return (2 * tm * d_in_p * 2              # x tile (bf16), 2 buffers
            + 2 * d_in_p * tk_hid * 2        # W1 slice (bf16), 2 buffers
            + 2 * tk_hid * d_out_p * 2       # W2 slice (bf16), 2 buffers
            + 2 * tm * d_out_p * out_itemsize  # out tile, 2 buffers
            + tm * d_out_p * 4               # f32 accumulator scratch
            + tm * tk_hid * 4                # live f32 h slice
            + tm * tk_hid * 2                # bf16 cast of h slice
            + 2 * (tk_hid + d_out_p) * 4)    # bias tiles (f32)


def _hidden_tile_candidates(d_hid_p, cap=512):
    """128-multiple divisors of the padded hidden dim, descending (<= cap)."""
    n = d_hid_p // 128
    divs = sorted({d for d in range(1, n + 1) if n % d == 0}, reverse=True)
    tiles = [d * 128 for d in divs if d * 128 <= cap]
    return tiles or [128]


# ---------------------------------------------------------------------------
# Kernels
# ---------------------------------------------------------------------------

def mlp_kernel_resident(x_ref, w1_ref, b1_ref, w2_ref, b2_ref, o_ref):
    """Fully fused MLP; W1/W2 stay VMEM-resident across row tiles.

    x_ref : (tm, D_in)      bf16     w1_ref: (D_in, D_hid)  bf16
    b1_ref: (1, D_hid)      f32      w2_ref: (D_hid, D_out) bf16
    b2_ref: (1, D_out)      f32      o_ref : (tm, D_out)
    """
    h = jnp.dot(x_ref[...], w1_ref[...], preferred_element_type=jnp.float32)
    h = _gelu_exact_f32(h + b1_ref[...])
    # TODO(synk): dropout (p > 0) would need pltpu.prng_seed/prng_random_bits; p = 0 here.
    o_ref[...] = (jnp.dot(h.astype(w2_ref.dtype), w2_ref[...],
                          preferred_element_type=jnp.float32)
                  + b2_ref[...]).astype(o_ref.dtype)


def mlp_kernel_streamed(x_ref, w1_ref, b1_ref, w2_ref, b2_ref, o_ref, acc_ref):
    """Fused MLP with the hidden dim streamed over grid axis 1 (reduction)."""
    k = pl.program_id(1)

    @pl.when(k == 0)
    def _():
        acc_ref[...] = jnp.zeros_like(acc_ref)

    # fc1 slice on the MXU (bf16 in, f32 accumulate); bias + GELU in f32.
    h = jnp.dot(x_ref[...], w1_ref[...], preferred_element_type=jnp.float32)
    h = _gelu_exact_f32(h + b1_ref[...])

    # fc2 partial product accumulated into the f32 scratch.
    acc_ref[...] += jnp.dot(h.astype(w2_ref.dtype), w2_ref[...],
                            preferred_element_type=jnp.float32)

    @pl.when(k == pl.num_programs(1) - 1)
    def _():
        o_ref[...] = (acc_ref[...] + b2_ref[...]).astype(o_ref.dtype)


# ---------------------------------------------------------------------------
# Parameter preparation (hoisted out of the forward path)
# ---------------------------------------------------------------------------

def prepare_mlp_params(w1, b1, w2, b2):
    """Pad feature dims to multiples of 128 and cast weights to bf16, ONCE."""
    D_in, D_hid = w1.shape
    D_out = w2.shape[1]
    d_in_p = _round_up(D_in, 128)
    d_hid_p = _round_up(D_hid, 128)
    d_out_p = _round_up(D_out, 128)

    w1_p = jnp.pad(w1, ((0, d_in_p - D_in), (0, d_hid_p - D_hid))).astype(jnp.bfloat16)
    w2_p = jnp.pad(w2, ((0, d_hid_p - D_hid), (0, d_out_p - D_out))).astype(jnp.bfloat16)
    b1_p = jnp.pad(b1, (0, d_hid_p - D_hid)).astype(jnp.float32).reshape(1, d_hid_p)
    b2_p = jnp.pad(b2, (0, d_out_p - D_out)).astype(jnp.float32).reshape(1, d_out_p)
    return w1_p, b1_p, w2_p, b2_p


# ---------------------------------------------------------------------------
# Forward
# ---------------------------------------------------------------------------

@functools.partial(jax.jit, static_argnames=("d_out",))
def mlp_forward(x, w1_p, b1_p, w2_p, b2_p, *, d_out):
    """x: (B, S, D_in) -> (B, S, d_out).  Weights are pre-padded bf16 (in, hid)/(hid, out)."""
    B, S, D_in = x.shape
    d_in_p, d_hid_p = w1_p.shape
    d_out_p = w2_p.shape[1]
    M = B * S
    out_itemsize = jnp.dtype(x.dtype).itemsize

    vmem_budget, vmem_cap = _vmem_budget_and_limit()

    # ---- row tile: weight-reuse factor; multiple of 16 (bf16 sublanes) -------
    tm = min(512, _round_up(M, 16))
    tm_candidates = []
    for t in (tm, 256, 128, 64, 32, 16):
        if t <= tm and t not in tm_candidates:
            tm_candidates.append(t)

    # ---- try the weights-resident fast path ----------------------------------
    resident_cfg = None
    for tm_try in tm_candidates[:3]:   # keep tm large; weights dominate anyway
        if _vmem_bytes_resident(tm_try, d_in_p, d_hid_p, d_out_p, out_itemsize) <= vmem_budget:
            resident_cfg = tm_try
            break

    # ---- otherwise pick a streamed (tm, tk_hid): shrink tk_hid before tm -----
    streamed_cfg = None
    if resident_cfg is None:
        tk_candidates = _hidden_tile_candidates(d_hid_p, cap=512)
        for tm_try in tm_candidates:
            for tk in tk_candidates:
                if _vmem_bytes_streamed(tm_try, d_in_p, tk, d_out_p, out_itemsize) <= vmem_budget:
                    streamed_cfg = (tm_try, tk)
                    break
            if streamed_cfg is not None:
                break
        if streamed_cfg is None:
            streamed_cfg = (16, 128)   # last resort

    tm = resident_cfg if resident_cfg is not None else streamed_cfg[0]
    M_pad = _round_up(M, tm)
    n_row_tiles = M_pad // tm

    # ---- zero-pad + cast the activations (per call) --------------------------
    x2 = x.reshape(M, D_in)
    x_p = jnp.pad(x2, ((0, M_pad - M), (0, d_in_p - D_in))).astype(jnp.bfloat16)

    flops = 2 * M * (d_in_p * d_hid_p + d_hid_p * d_out_p)
    transcendentals = M * d_hid_p
    weight_bytes = w1_p.size * 2 + w2_p.size * 2
    bias_bytes = b1_p.size * 4 + b2_p.size * 4
    io_bytes = x_p.size * 2 + M_pad * d_out_p * out_itemsize

    if resident_cfg is not None:
        # ---------------- weights-resident path -------------------------------
        vmem_need = _vmem_bytes_resident(tm, d_in_p, d_hid_p, d_out_p, out_itemsize)
        vmem_limit = int(min(max(2 * vmem_need, 32 << 20), vmem_cap))
        cost = pl.CostEstimate(
            flops=flops, transcendentals=transcendentals,
            bytes_accessed=io_bytes + weight_bytes + bias_bytes)

        out = pl.pallas_call(
            mlp_kernel_resident,
            out_shape=jax.ShapeDtypeStruct((M_pad, d_out_p), x.dtype),
            grid_spec=pltpu.PrefetchScalarGridSpec(
                num_scalar_prefetch=0,
                grid=(n_row_tiles,),
                in_specs=[
                    pl.BlockSpec((tm, d_in_p), lambda i: (i, 0)),        # x row tile
                    pl.BlockSpec((d_in_p, d_hid_p), lambda i: (0, 0)),   # W1 (resident)
                    pl.BlockSpec((1, d_hid_p), lambda i: (0, 0)),        # b1 (resident)
                    pl.BlockSpec((d_hid_p, d_out_p), lambda i: (0, 0)),  # W2 (resident)
                    pl.BlockSpec((1, d_out_p), lambda i: (0, 0)),        # b2 (resident)
                ],
                out_specs=pl.BlockSpec((tm, d_out_p), lambda i: (i, 0)),
            ),
            compiler_params=pltpu.CompilerParams(
                dimension_semantics=("parallel",),
                vmem_limit_bytes=vmem_limit),
            cost_estimate=cost,
        )(x_p, w1_p, b1_p, w2_p, b2_p)
    else:
        # ---------------- hidden-streamed fallback ----------------------------
        tm, tk_hid = streamed_cfg
        n_k = d_hid_p // tk_hid
        vmem_need = _vmem_bytes_streamed(tm, d_in_p, tk_hid, d_out_p, out_itemsize)
        vmem_limit = int(min(max(2 * vmem_need, 32 << 20), vmem_cap))
        cost = pl.CostEstimate(
            flops=flops, transcendentals=transcendentals,
            # weights are re-streamed once per row tile
            bytes_accessed=io_bytes + n_row_tiles * weight_bytes + bias_bytes)

        out = pl.pallas_call(
            mlp_kernel_streamed,
            out_shape=jax.ShapeDtypeStruct((M_pad, d_out_p), x.dtype),
            grid_spec=pltpu.PrefetchScalarGridSpec(
                num_scalar_prefetch=0,
                grid=(n_row_tiles, n_k),           # rows (parallel), hidden (reduction)
                in_specs=[
                    pl.BlockSpec((tm, d_in_p), lambda i, k: (i, 0)),       # x row tile
                    pl.BlockSpec((d_in_p, tk_hid), lambda i, k: (0, k)),   # W1 col slice
                    pl.BlockSpec((1, tk_hid), lambda i, k: (0, k)),        # b1 slice
                    pl.BlockSpec((tk_hid, d_out_p), lambda i, k: (k, 0)),  # W2 row slice
                    pl.BlockSpec((1, d_out_p), lambda i, k: (0, 0)),       # b2
                ],
                out_specs=pl.BlockSpec((tm, d_out_p), lambda i, k: (i, 0)),
                scratch_shapes=[pltpu.VMEM((tm, d_out_p), jnp.float32)],
            ),
            compiler_params=pltpu.CompilerParams(
                dimension_semantics=("parallel", "arbitrary"),
                vmem_limit_bytes=vmem_limit),
            cost_estimate=cost,
        )(x_p, w1_p, b1_p, w2_p, b2_p)

    return out[:M, :d_out].reshape(B, S, d_out)


# ---------------------------------------------------------------------------
# Init + self-test
# ---------------------------------------------------------------------------

def init_mlp_params(key, in_features, hidden_features=None, out_features=None):
    """Deterministic init mimicking torch nn.Linear default (uniform +-1/sqrt(fan_in))."""
    hidden_features = hidden_features or in_features
    out_features = out_features or in_features
    k1, k2, k3, k4 = jax.random.split(key, 4)
    lim1 = 1.0 / jnp.sqrt(in_features)
    lim2 = 1.0 / jnp.sqrt(hidden_features)
    # stored as (in, hidden) / (hidden, out) == torch weight transposed
    w1 = jax.random.uniform(k1, (in_features, hidden_features), jnp.float32, -lim1, lim1)
    b1 = jax.random.uniform(k2, (hidden_features,), jnp.float32, -lim1, lim1)
    w2 = jax.random.uniform(k3, (hidden_features, out_features), jnp.float32, -lim2, lim2)
    b2 = jax.random.uniform(k4, (out_features,), jnp.float32, -lim2, lim2)
    return w1, b1, w2, b2


if __name__ == "__main__":
    key = jax.random.PRNGKey(0)
    kx, kp = jax.random.split(key)

    B, S = 2, 8
    in_features, hidden_features, out_features = 32, 64, 32

    x = jax.random.normal(kx, (B, S, in_features), jnp.float32)
    w1, b1, w2, b2 = init_mlp_params(kp, in_features, hidden_features, out_features)

    # Hoisted (one-time) weight padding + bf16 cast.
    w1_p, b1_p, w2_p, b2_p = prepare_mlp_params(w1, b1, w2, b2)

    y = mlp_forward(x, w1_p, b1_p, w2_p, b2_p, d_out=out_features)
    y = jax.block_until_ready(y)
    assert y.shape == (B, S, out_features)

    # Reference 1: same numerics as the kernel (bf16 matmul inputs, f32 accum).
    xb = x.reshape(-1, in_features).astype(jnp.bfloat16)
    h = jnp.dot(xb, w1.astype(jnp.bfloat16), preferred_element_type=jnp.float32) + b1
    h = 0.5 * h * (1.0 + lax.erf(h * _SQRT_HALF))
    y_bf = (jnp.dot(h.astype(jnp.bfloat16), w2.astype(jnp.bfloat16),
                    preferred_element_type=jnp.float32) + b2)
    y_bf = y_bf.reshape(B, S, out_features)
    assert jnp.allclose(y, y_bf, atol=1e-3, rtol=1e-3), "mismatch vs bf16-emulated reference"

    # Reference 2: full f32 torch-equivalent path (loose tolerance for bf16 inputs).
    hf = x.reshape(-1, in_features) @ w1 + b1
    hf = 0.5 * hf * (1.0 + lax.erf(hf * _SQRT_HALF))
    y_f32 = (hf @ w2 + b2).reshape(B, S, out_features)
    assert jnp.allclose(y, y_f32, atol=5e-2, rtol=5e-2), "mismatch vs f32 reference"

    print("KERNEL_OK")
</pallas_src>

<mosaic_0001>
module attributes {stable_mosaic.version = 11 : i64} {
  func.func @mlp_kernel_resident(%arg0: i32, %arg1: memref<16x128xbf16, #tpu.memory_space<vmem>>, %arg2: memref<128x128xbf16, #tpu.memory_space<vmem>>, %arg3: memref<1x128xf32, #tpu.memory_space<vmem>>, %arg4: memref<128x128xbf16, #tpu.memory_space<vmem>>, %arg5: memref<1x128xf32, #tpu.memory_space<vmem>>, %arg6: memref<16x128xf32, #tpu.memory_space<vmem>>) attributes {dimension_semantics = [#tpu.dimension_semantics<parallel>], iteration_bounds = array<i64: 1>, scalar_prefetch = 0 : i64, scratch_operands = 0 : i64, tpu.core_type = #tpu.core_type<tc>, window_params = [{transform_indices = @transform_0, window_bounds = array<i64: 16, 128>}, {pipeline_mode = #tpu.pipeline_mode<synchronous>, transform_indices = @transform_1, window_bounds = array<i64: 128, 128>}, {pipeline_mode = #tpu.pipeline_mode<synchronous>, transform_indices = @transform_2, window_bounds = array<i64: 1, 128>}, {pipeline_mode = #tpu.pipeline_mode<synchronous>, transform_indices = @transform_3, window_bounds = array<i64: 128, 128>}, {pipeline_mode = #tpu.pipeline_mode<synchronous>, transform_indices = @transform_4, window_bounds = array<i64: 1, 128>}, {transform_indices = @transform_5, window_bounds = array<i64: 16, 128>}]} {
    %c0 = arith.constant 0 : index
    %c0_0 = arith.constant 0 : index
    %0 = vector.load %arg1[%c0, %c0_0] : memref<16x128xbf16, #tpu.memory_space<vmem>>, vector<16x128xbf16>
    %c0_1 = arith.constant 0 : index
    %c0_2 = arith.constant 0 : index
    %1 = vector.load %arg2[%c0_1, %c0_2] : memref<128x128xbf16, #tpu.memory_space<vmem>>, vector<128x128xbf16>
    %cst = arith.constant dense<0.000000e+00> : vector<16x128xf32>
    %2 = tpu.matmul %0, %1, %cst {dimension_numbers = #tpu.dot_dimension_numbers<[1], [0], [0], [1], [0, 0, 1, 1], [], []>} : vector<16x128xbf16>, vector<128x128xbf16>, vector<16x128xf32> -> vector<16x128xf32>
    %c0_3 = arith.constant 0 : index
    %c0_4 = arith.constant 0 : index
    %3 = vector.load %arg3[%c0_3, %c0_4] : memref<1x128xf32, #tpu.memory_space<vmem>>, vector<1x128xf32>
    %4 = vector.broadcast %3 : vector<1x128xf32> to vector<16x128xf32>
    %5 = arith.addf %2, %4 : vector<16x128xf32>
    %cst_5 = arith.constant 5.000000e-01 : f32
    %6 = vector.broadcast %cst_5 : f32 to vector<16x128xf32>
    %7 = arith.mulf %6, %5 : vector<16x128xf32>
    %cst_6 = arith.constant 0.707106769 : f32
    %8 = vector.broadcast %cst_6 : f32 to vector<16x128xf32>
    %9 = arith.mulf %5, %8 : vector<16x128xf32>
    %10 = math.erf %9 : vector<16x128xf32>
    %cst_7 = arith.constant 1.000000e+00 : f32
    %11 = vector.broadcast %cst_7 : f32 to vector<16x128xf32>
    %12 = arith.addf %11, %10 : vector<16x128xf32>
    %13 = arith.mulf %7, %12 : vector<16x128xf32>
    %14 = arith.truncf %13 : vector<16x128xf32> to vector<16x128xbf16>
    %c0_8 = arith.constant 0 : index
    %c0_9 = arith.constant 0 : index
    %15 = vector.load %arg4[%c0_8, %c0_9] : memref<128x128xbf16, #tpu.memory_space<vmem>>, vector<128x128xbf16>
    %cst_10 = arith.constant dense<0.000000e+00> : vector<16x128xf32>
    %16 = tpu.matmul %14, %15, %cst_10 {dimension_numbers = #tpu.dot_dimension_numbers<[1], [0], [0], [1], [0, 0, 1, 1], [], []>} : vector<16x128xbf16>, vector<128x128xbf16>, vector<16x128xf32> -> vector<16x128xf32>
    %c0_11 = arith.constant 0 : index
    %c0_12 = arith.constant 0 : index
    %17 = vector.load %arg5[%c0_11, %c0_12] : memref<1x128xf32, #tpu.memory_space<vmem>>, vector<1x128xf32>
    %18 = vector.broadcast %17 : vector<1x128xf32> to vector<16x128xf32>
    %19 = arith.addf %16, %18 : vector<16x128xf32>
    %c0_13 = arith.constant 0 : index
    %c0_14 = arith.constant 0 : index
    %20 = vector.load %arg6[%c0_13, %c0_14] : memref<16x128xf32, #tpu.memory_space<vmem>>, vector<16x128xf32>
    tpu.vector_store %arg6[%c0_13, %c0_14], %19 {strides = array<i32>} : memref<16x128xf32, #tpu.memory_space<vmem>>, vector<16x128xf32>,
    return
  }
  func.func @transform_0(%arg0: i32) -> (i32, i32) {
    %c0_i32 = arith.constant 0 : i32
    %c0_i32_0 = arith.constant 0 : i32
    return %arg0, %c0_i32 : i32, i32
  }
  func.func @transform_1(%arg0: i32) -> (i32, i32) {
    %c0_i32 = arith.constant 0 : i32
    %c0_i32_0 = arith.constant 0 : i32
    %c0_i32_1 = arith.constant 0 : i32
    return %c0_i32, %c0_i32_0 : i32, i32
  }
  func.func @transform_2(%arg0: i32) -> (i32, i32) {
    %c0_i32 = arith.constant 0 : i32
    %c0_i32_0 = arith.constant 0 : i32
    %c0_i32_1 = arith.constant 0 : i32
    return %c0_i32, %c0_i32_0 : i32, i32
  }
  func.func @transform_3(%arg0: i32) -> (i32, i32) {
    %c0_i32 = arith.constant 0 : i32
    %c0_i32_0 = arith.constant 0 : i32
    %c0_i32_1 = arith.constant 0 : i32
    return %c0_i32, %c0_i32_0 : i32, i32
  }
  func.func @transform_4(%arg0: i32) -> (i32, i32) {
    %c0_i32 = arith.constant 0 : i32
    %c0_i32_0 = arith.constant 0 : i32
    %c0_i32_1 = arith.constant 0 : i32
    return %c0_i32, %c0_i32_0 : i32, i32
  }
  func.func @transform_5(%arg0: i32) -> (i32, i32) {
    %c0_i32 = arith.constant 0 : i32
    %c0_i32_0 = arith.constant 0 : i32
    return %arg0, %c0_i32 : i32, i32
  }
}

</mosaic_0001>

<bundles_post_ra>
// kernel: mlp_forward.1
= control target key start
LH: loop header
LB: loop body
LE: loop exit
PB: predicated region body
PF: predicated region fallthrough
CT: control target
= control target key end

     0   :  { %10 = vsyncpa [#allocation3], 0  ;;  %s527_s0 = inlined_call_operand.vmem [shape: bf16[16,128], index: 0, kind: input, shape index: {}]   ;;  %s528_s1 = inlined_call_operand.hbm [shape: bf16[128,128], index: 1, kind: input, shape index: {}]   ;;  %s529_s2 = inlined_call_operand.vmem [shape: f32[1,128], index: 2, kind: input, shape index: {}]   ;;  %s530_s3 = inlined_call_operand.hbm [shape: bf16[128,128], index: 3, kind: input, shape index: {}]   ;;  %s531_s4 = inlined_call_operand.vmem [shape: f32[1,128], index: 4, kind: input, shape index: {}]   ;;  %s532_s5 = inlined_call_operand.vmem [shape: f32[16,128], index: 5, kind: output, shape index: {}]  }
   0x1   :  { %11 = vsyncpa [#allocation5], 0  ;;  %s452_s18 = smov [#allocation2]   ;;  %s404_s22 = scalar_lea.hbm %s528_s1, 1024 }
   0x2   :  { %s19_s19 = sshll.u32 %s452_s18, 4  ;;  %p405_p0 = scmp.ne.s32.totalorder %s528_s1, %s404_s22  ;;  %s20_s19 = int_to_ptr.vmem [resolvable:$true] %s19_s19 }
   0x3   :  { %p408_p1 = scmp.lt.u32.totalorder %s404_s22, %s528_s1 }
   0x5   :  { %p410_p2 = pnand %p408_p1, %p405_p0 }
   0x7   :  { %413 = shalt.err (!%p410_p2)
}
   0x8   :  { %s414_s27 = scalar_lea.vmem %s20_s19, 1024  ;;  %p419_p4 = scmp.lt.s32.totalorder %s20_s19, %s20_s19 }
   0x9   :  { %p415_p3 = scmp.ne.s32.totalorder %s20_s19, %s414_s27  ;;  %p420_p5 = scmp.lt.s32.totalorder %s414_s27, %s414_s27 }
   0xb   :  { %p421_p6 = por %p420_p5, %p419_p4 }
   0xd   :  { %p422_p7 = pnand %p421_p6, %p415_p3 }
   0xf   :  { %425 = shalt.err (!%p422_p7)
}
  0x10   :  { %s453_s28 = smov 64   ;;  %s454_s29 = smov 4  }
  0x11   :  { %25 = dma.hbm_to_vmem [thread:$0]  %s528_s1, 1024, %s20_s19, [#allocation3], %s453_s28, %s453_s28, %s454_s29  }
  0x12   :  { %s455_s7 = smov [#allocation4]   ;;  %s426_s11 = scalar_lea.hbm %s530_s3, 1024 }
  0x13   :  { %s33_s8 = sshll.u32 %s455_s7, 4  ;;  %p427_p8 = scmp.ne.s32.totalorder %s530_s3, %s426_s11  ;;  %s34_s8 = int_to_ptr.vmem [resolvable:$true] %s33_s8 }
  0x14   :  { %p430_p9 = scmp.lt.u32.totalorder %s426_s11, %s530_s3 }
  0x16   :  { %p432_p10 = pnand %p430_p9, %p427_p8 }
  0x18   :  { %435 = shalt.err (!%p432_p10)
}
  0x19   :  { %s436_s16 = scalar_lea.vmem %s34_s8, 1024  ;;  %p441_p12 = scmp.lt.s32.totalorder %s34_s8, %s34_s8 }
  0x1a   :  { %p437_p11 = scmp.ne.s32.totalorder %s34_s8, %s436_s16  ;;  %p442_p13 = scmp.lt.s32.totalorder %s436_s16, %s436_s16 }
  0x1c   :  { %p443_p0 = por %p442_p13, %p441_p12 }
  0x1e   :  { %p444_p1 = pnand %p443_p0, %p437_p11 }
  0x20   :  { %447 = shalt.err (!%p444_p1)
}
  0x21   :  { %39 = dma.hbm_to_vmem [thread:$0]  %s530_s3, 1024, %s34_s8, [#allocation5], %s453_s28, %s453_s28, %s454_s29  }
  0x22   :  { %448 = dma.done.wait [#allocation3], 1024  }
  0x23   :  { %449 = vsyncadd [#allocation3], 4294966272 }
  0x24   :  { %450 = dma.done.wait [#allocation5], 1024  }
  0x25   :  { %451 = vsyncadd [#allocation5], 4294966272  ;;  %v456_v0 = vmov 0.0   ;;  %vm457_vm0 = vmmov 0   ;;  %v383_v1 = vld [vmem:[#allocation2] sm:$0xff]   ;;  %v384_v2 = vld [vmem:[#allocation2 + $0x8] sm:$0xff]  }
  0x26   :  { %337 = vmatprep.subr.bf16.mxu0 %v456_v0  ;;  %353 = vmatprep.mubr.msk.bf16.mxu0 %vm457_vm0, %v456_v0  ;;  %v385_v3 = vld [vmem:[#allocation2 + $0x10] sm:$0xff]   ;;  %v392_v4 = vld [vmem:[#allocation4] sm:$0xff]   ;;  %v386_v5 = vld [vmem:[#allocation2 + $0x18] sm:$0xff]  }
  0x27   :  { %357 = vmatprep.subr.bf16.mxu1 %v456_v0  ;;  %373 = vmatprep.mubr.msk.bf16.mxu1 %vm457_vm0, %v456_v0  ;;  %v393_v6 = vld [vmem:[#allocation4 + $0x8] sm:$0xff]   ;;  %v387_v7 = vld [vmem:[#allocation2 + $0x20] sm:$0xff]   ;;  %v389_v9 = vld [vmem:[#allocation2 + $0x30] sm:$0xff]  }
  0x28   :  { %338 = vmatpush3.bf16.msra.mxu0 %v383_v1  ;;  %358 = vmatpush3.bf16.msra.mxu1 %v392_v4  ;;  %v388_v8 = vld [vmem:[#allocation2 + $0x28] sm:$0xff]   ;;  %v390_v10 = vld [vmem:[#allocation2 + $0x38] sm:$0xff]   ;;  %v391_v11 = vld [vmem:[%s527_s0] sm:$0xff]  }
  0x29   :  { %339 = vmatprep.subr.bf16.mxu0 %v456_v0  ;;  %359 = vmatprep.subr.bf16.mxu1 %v456_v0  ;;  %v394_v12 = vld [vmem:[#allocation4 + $0x10] sm:$0xff]   ;;  %v395_v13 = vld [vmem:[#allocation4 + $0x18] sm:$0xff]   ;;  %v396_v14 = vld [vmem:[#allocation4 + $0x20] sm:$0xff]  }
  0x2a   :  { %v397_v15 = vld [vmem:[#allocation4 + $0x28] sm:$0xff]   ;;  %v398_v16 = vld [vmem:[#allocation4 + $0x30] sm:$0xff]   ;;  %v399_v17 = vld [vmem:[#allocation4 + $0x38] sm:$0xff]  }
  0x2b   :  { %v300_v18 = vld [vmem:[%s529_s2] ss:$0 sm:$0xff] }
  0x2c   :  { %340 = vmatpush3.bf16.msra.mxu0 %v384_v2  ;;  %360 = vmatpush3.bf16.msra.mxu1 %v393_v6  ;;  %v310_v36 = vld [vmem:[%s531_s4] ss:$0 sm:$0xff] }
  0x2d   :  { %341 = vmatprep.subr.bf16.mxu0 %v456_v0  ;;  %361 = vmatprep.subr.bf16.mxu1 %v456_v0 }
  0x30   :  { %342 = vmatpush3.bf16.msra.mxu0 %v385_v3  ;;  %362 = vmatpush3.bf16.msra.mxu1 %v394_v12 }
  0x31   :  { %343 = vmatprep.subr.bf16.mxu0 %v456_v0  ;;  %363 = vmatprep.subr.bf16.mxu1 %v456_v0 }
  0x34   :  { %344 = vmatpush3.bf16.msra.mxu0 %v386_v5  ;;  %364 = vmatpush3.bf16.msra.mxu1 %v395_v13 }
  0x35   :  { %345 = vmatprep.subr.bf16.mxu0 %v456_v0  ;;  %365 = vmatprep.subr.bf16.mxu1 %v456_v0 }
  0x38   :  { %346 = vmatpush3.bf16.msra.mxu0 %v387_v7  ;;  %366 = vmatpush3.bf16.msra.mxu1 %v396_v14 }
  0x39   :  { %347 = vmatprep.subr.bf16.mxu0 %v456_v0  ;;  %367 = vmatprep.subr.bf16.mxu1 %v456_v0 }
  0x3c   :  { %348 = vmatpush3.bf16.msra.mxu0 %v388_v8  ;;  %368 = vmatpush3.bf16.msra.mxu1 %v397_v15 }
  0x3d   :  { %349 = vmatprep.subr.bf16.mxu0 %v456_v0  ;;  %369 = vmatprep.subr.bf16.mxu1 %v456_v0 }
  0x40   :  { %350 = vmatpush3.bf16.msra.mxu0 %v389_v9  ;;  %370 = vmatpush3.bf16.msra.mxu1 %v398_v16 }
  0x41   :  { %351 = vmatprep.subr.bf16.mxu0 %v456_v0  ;;  %371 = vmatprep.subr.bf16.mxu1 %v456_v0 }
  0x44   :  { %352 = vmatpush3.bf16.msra.mxu0 %v390_v10  ;;  %372 = vmatpush3.bf16.msra.mxu1 %v399_v17 }
  0x47   :  { %354 = vmatmul.mubr.bf16.vlgmr.msra.gmra.mrb[0].mxu0 %v391_v11 }
 0x11a   :  { %v162_v19 = vpop.f32.mrb[0].mxu0 }
 0x11b   :  { %v163_v20 = vadd.f32 %v300_v18, %v162_v19  ;;  %v355_v21 = vpop.f32.mrb[1].mxu0 }
 0x11c   :  { %v165_v22 = vpop.f32.mrb[2].mxu0 }
 0x11d   :  { %v171_v23 = vmul.f32 0.70710677, %v163_v20  ;;  %v166_v24 = vadd.f32 %v300_v18, %v165_v22  ;;  %v356_v25 = vpop.f32.mrb[3].mxu0  ;;  %v169_v30 = vmul.f32 0.5, %v163_v20 }
 0x11f   :  { %400 = verf.f32 %v171_v23  ;;  %v172_v26 = vmul.f32 0.70710677, %v166_v24  ;;  %v170_v31 = vmul.f32 0.5, %v166_v24 }
 0x121   :  { %402 = verf.f32 %v172_v26 }
 0x129   :  { %v401_v27 = vpop.eup %400 }
 0x12a   :  { %v175_v28 = vadd.f32 1.0, %v401_v27 }
 0x12b   :  { %v403_v29 = vpop.eup %402 }
 0x12c   :  { %v176_v32 = vadd.f32 1.0, %v403_v29  ;;  %v177_v33 = vmul.f32 %v175_v28, %v169_v30 }
 0x12e   :  { %v178_v34 = vmul.f32 %v176_v32, %v170_v31 }
 0x130   :  { %v179_v35 = vpack.c.bf16 %v178_v34, %v177_v33 }
 0x132   :  { %374 = vmatmul.mubr.bf16.vlgmr.msra.gmra.mrb[0].mxu1 %v179_v35 }
 0x205   :  { %v285_v37 = vpop.f32.mrb[0].mxu1 }
 0x206   :  { %v286_v38 = vadd.f32 %v310_v36, %v285_v37  ;;  %v375_v39 = vpop.f32.mrb[1].mxu1 }
 0x207   :  { %v288_v40 = vpop.f32.mrb[2].mxu1 }
 0x208   :  { %292 = vst [vmem:[%s532_s5] sm:$0xff] %v286_v38  ;;  %v289_v41 = vadd.f32 %v310_v36, %v288_v40  ;;  %v376_v42 = vpop.f32.mrb[3].mxu1 }
 0x20a   :  { %293 = vst [vmem:[%s532_s5 + $0x8] sm:$0xff] %v289_v41 }
 0x20b   :  { %298 = vsyncpa [#allocation3], 1 }
 0x20c   :  { %299 = vsyncpa [#allocation5], 1 }

</bundles_post_ra>
